<compile_context>
chip_gen: v6e
topology: v6e:2x2x1
jax: 0.10.0
libtpu: 0.0.40
codegen_flags: <defaults>
</compile_context>

<pallas_src>
import jax
import jax.numpy as jnp
from jax.experimental import pallas as pl
from jax.experimental.pallas import tpu as pltpu


def _round_up(x, m):
    return ((x + m - 1) // m) * m


def _cdiv(a, b):
    return (a + b - 1) // b


# ---------------------------------------------------------------------------
# Pallas kernel: whole MLP fused; weights VMEM-resident, batch tiled via grid.
# ---------------------------------------------------------------------------
def make_mlp_kernel(num_linear_layers: int):
    """Build a kernel for a fixed number of linear layers (known at trace time)."""

    def kernel(*refs):
        # refs = (x_ref, w0, b0, w1, b1, ..., out_ref)
        # x: f32 (TB, in) unpadded; weights: bf16 (in_i, out_i); biases: f32 (1, out_i)
        x_ref = refs[0]
        out_ref = refs[-1]
        param_refs = refs[1:-1]

        h = x_ref[...].astype(jnp.bfloat16)            # in-kernel cast (free VPU slot)
        for i in range(num_linear_layers):
            w = param_refs[2 * i][...]                 # bf16 (in_i, out_i)
            b = param_refs[2 * i + 1][...]             # f32  (1, out_i)
            acc = jnp.dot(h, w, preferred_element_type=jnp.float32) + b
            if i < num_linear_layers - 1:
                h = jnp.maximum(acc, 0.0).astype(jnp.bfloat16)   # ReLU on f32 acc
            else:
                out_ref[...] = acc.astype(out_ref.dtype)

    return kernel


# ---------------------------------------------------------------------------
# Parameter init (deterministic): orthogonal weights, zero biases.
# ---------------------------------------------------------------------------
def orthogonal_init(key, out_features, in_features, dtype=jnp.float32):
    """Mimics nn.init.orthogonal_ for a (out, in) weight matrix."""
    rows, cols = out_features, in_features
    flat = jax.random.normal(key, (max(rows, cols), min(rows, cols)), dtype=jnp.float32)
    q, r = jnp.linalg.qr(flat)
    d = jnp.sign(jnp.diag(r))
    q = q * d[None, :]
    if rows < cols:
        q = q.T
    return q.astype(dtype)


def make_mlp_params(key, input_dim, hidden_dim, output_dim, hidden_depth):
    """Returns list of (W_t, b) with W_t shaped (in, out), b shaped (1, out), f32."""
    if hidden_depth == 0:
        dims = [(input_dim, output_dim)]
    else:
        dims = [(input_dim, hidden_dim)]
        dims += [(hidden_dim, hidden_dim)] * (hidden_depth - 1)
        dims += [(hidden_dim, output_dim)]

    params = []
    keys = jax.random.split(key, len(dims))
    for k, (d_in, d_out) in zip(keys, dims):
        w = orthogonal_init(k, d_out, d_in)        # PyTorch layout (out, in)
        params.append((jnp.transpose(w),           # (in, out) for x @ W_t
                       jnp.zeros((1, d_out), jnp.float32)))
    return params


# ---------------------------------------------------------------------------
# VMEM cap (generation aware).
# ---------------------------------------------------------------------------
def _vmem_cap_bytes():
    try:
        cap = int(pltpu.get_tpu_info().vmem_capacity_bytes)
        return max(cap - (8 << 20), 16 << 20)          # ~8 MiB Mosaic headroom
    except Exception:
        return 56 << 20                                # conservative: v7x = 64 MiB/TC


# ---------------------------------------------------------------------------
# Wrapper around pallas_call.
# ---------------------------------------------------------------------------
def mlp_forward(x, params, *, batch_tile=512, out_dtype=jnp.float32):
    """x: (batch, input_dim) float32; params: list of (W_t, b) in f32.

    out_dtype defaults to f32 to match the PyTorch module; pass jnp.bfloat16 to
    halve output writeback bytes (values are bf16xbf16 products anyway).
    """
    batch, input_dim = x.shape
    num_layers = len(params)
    output_dim = params[-1][0].shape[1]

    # --- pad only the *hidden* feature dims to 128 multiples; bf16 weights ---
    flat_params = []
    for i, (w_t, b) in enumerate(params):
        d_in, d_out = w_t.shape
        p_in = d_in if i == 0 else _round_up(d_in, 128)
        p_out = d_out if i == num_layers - 1 else _round_up(d_out, 128)
        w_p = jnp.zeros((p_in, p_out), jnp.bfloat16).at[:d_in, :d_out].set(
            w_t.astype(jnp.bfloat16))
        b_p = jnp.zeros((1, p_out), jnp.float32).at[:, :d_out].set(
            b.astype(jnp.float32))
        flat_params += [w_p, b_p]

    resident_bytes = sum(int(p.size) * p.dtype.itemsize for p in flat_params)
    max_dim = max([input_dim, output_dim] +
                  [flat_params[2 * i].shape[1] for i in range(num_layers)])
    out_itemsize = jnp.dtype(out_dtype).itemsize
    cap = _vmem_cap_bytes()

    def footprint(tb_):
        # Worst case: weights double-buffered (over-estimate if the single-buffer
        # request below is honoured -> always a safe budget).
        return (2 * resident_bytes
                + 2 * tb_ * input_dim * 4              # x double buffer (f32)
                + 2 * tb_ * output_dim * out_itemsize  # out double buffer
                + 4 * tb_ * max_dim * 4                # activation temporaries
                + (2 << 20))                           # slack

    # --- batch tile selection: fit VMEM, keep grid steps evenly sized ---
    pb8 = _round_up(batch, 8)
    tb = min(_round_up(batch_tile, 8), pb8)
    while footprint(tb) > cap and tb > 8:
        tb = max(8, _round_up(tb // 2, 8))
    if footprint(tb) > cap:
        raise NotImplementedError(
            "MLP weights too large for the all-VMEM-resident kernel on this TPU "
            "(see TODO(synk) about a layer-tiled fallback).")

    num_steps = _cdiv(pb8, tb)
    tb = _round_up(_cdiv(pb8, num_steps), 8)           # rebalance -> even steps
    padded_batch = num_steps * tb

    # Only the batch dim is ever padded (cheap); features stay at true size.
    x_in = x if padded_batch == batch else jnp.pad(
        x, ((0, padded_batch - batch), (0, 0)))

    vmem_limit = int(min(max(footprint(tb), 4 << 20), cap))

    flops = 2 * padded_batch * sum(
        flat_params[2 * i].shape[0] * flat_params[2 * i].shape[1]
        for i in range(num_layers))
    bytes_accessed = (padded_batch * input_dim * 4 + resident_bytes
                      + padded_batch * output_dim * out_itemsize)
    cost = pl.CostEstimate(flops=flops, transcendentals=0,
                           bytes_accessed=bytes_accessed)

    def build_and_run(single_buffer_weights: bool):
        if single_buffer_weights:
            # Constant block index -> one buffer is enough; halves resident VMEM.
            resident_spec = lambda a: pl.BlockSpec(
                a.shape, lambda i: (0, 0),
                pipeline_mode=pl.Buffered(buffer_count=1))
        else:
            resident_spec = lambda a: pl.BlockSpec(a.shape, lambda i: (0, 0))

        out = pl.pallas_call(
            make_mlp_kernel(num_layers),
            out_shape=jax.ShapeDtypeStruct((padded_batch, output_dim), out_dtype),
            grid=(num_steps,),
            in_specs=[pl.BlockSpec((tb, input_dim), lambda i: (i, 0))]
                     + [resident_spec(p) for p in flat_params],
            out_specs=pl.BlockSpec((tb, output_dim), lambda i: (i, 0)),
            compiler_params=pltpu.CompilerParams(
                dimension_semantics=("parallel",),     # megacore sharding on v7x
                vmem_limit_bytes=vmem_limit),
            cost_estimate=cost,
        )(x_in, *flat_params)
        return jax.block_until_ready(out)

    try:
        out = build_and_run(True)
    except Exception:
        # Installed Pallas rejected single-buffering of invariant blocks; the
        # VMEM budget already assumed double-buffered weights, so just retry.
        out = build_and_run(False)

    return out if padded_batch == batch else out[:batch]


# ---------------------------------------------------------------------------
# Pure-JAX references for sanity checking.
# ---------------------------------------------------------------------------
def mlp_ref_bf16(x, params):
    """Mirrors the kernel arithmetic: bf16 inputs, f32 accumulation."""
    h = x.astype(jnp.bfloat16)
    for i, (w_t, b) in enumerate(params):
        h = jnp.dot(h, w_t.astype(jnp.bfloat16),
                    preferred_element_type=jnp.float32) + b
        if i < len(params) - 1:
            h = jnp.maximum(h, 0.0).astype(jnp.bfloat16)
    return h


def mlp_ref_f32(x, params):
    h = x
    for i, (w_t, b) in enumerate(params):
        h = h @ w_t + b
        if i < len(params) - 1:
            h = jnp.maximum(h, 0.0)
    return h


if __name__ == "__main__":
    key = jax.random.PRNGKey(0)
    k_x, k_p = jax.random.split(key)

    batch = 8
    input_dim = 16
    hidden_dim = 32
    output_dim = 8
    hidden_depth = 2

    x = jax.random.normal(k_x, (batch, input_dim), dtype=jnp.float32)
    params = make_mlp_params(k_p, input_dim, hidden_dim, output_dim, hidden_depth)

    out = jax.block_until_ready(mlp_forward(x, params))
    assert out.shape == (batch, output_dim)

    # Exact-arithmetic mirror (bf16 inputs, f32 accumulation).
    ref = mlp_ref_bf16(x, params)
    assert jnp.allclose(out, ref, atol=1e-3, rtol=1e-3), "mismatch vs bf16 reference"

    # Loose check vs pure-f32 math (bf16 quantization of inputs/weights).
    ref32 = mlp_ref_f32(x, params)
    assert jnp.allclose(out, ref32, atol=5e-2, rtol=5e-2), "mismatch vs f32 reference"

    print("KERNEL_OK")
</pallas_src>

<mosaic_0001>
module attributes {stable_mosaic.version = 11 : i64} {
  func.func @kernel(%arg0: i32, %arg1: memref<8x16xf32, #tpu.memory_space<vmem>>, %arg2: memref<16x128xbf16, #tpu.memory_space<vmem>>, %arg3: memref<1x128xf32, #tpu.memory_space<vmem>>, %arg4: memref<128x128xbf16, #tpu.memory_space<vmem>>, %arg5: memref<1x128xf32, #tpu.memory_space<vmem>>, %arg6: memref<128x8xbf16, #tpu.memory_space<vmem>>, %arg7: memref<1x8xf32, #tpu.memory_space<vmem>>, %arg8: memref<8x8xf32, #tpu.memory_space<vmem>>) attributes {dimension_semantics = [#tpu.dimension_semantics<parallel>], iteration_bounds = array<i64: 1>, scalar_prefetch = 0 : i64, scratch_operands = 0 : i64, tpu.core_type = #tpu.core_type<tc>, window_params = [{transform_indices = @transform_0, window_bounds = array<i64: 8, 16>}, {pipeline_mode = #tpu.pipeline_mode<synchronous>, transform_indices = @transform_1, window_bounds = array<i64: 16, 128>}, {pipeline_mode = #tpu.pipeline_mode<synchronous>, transform_indices = @transform_2, window_bounds = array<i64: 1, 128>}, {pipeline_mode = #tpu.pipeline_mode<synchronous>, transform_indices = @transform_3, window_bounds = array<i64: 128, 128>}, {pipeline_mode = #tpu.pipeline_mode<synchronous>, transform_indices = @transform_4, window_bounds = array<i64: 1, 128>}, {pipeline_mode = #tpu.pipeline_mode<synchronous>, transform_indices = @transform_5, window_bounds = array<i64: 128, 8>}, {pipeline_mode = #tpu.pipeline_mode<synchronous>, transform_indices = @transform_6, window_bounds = array<i64: 1, 8>}, {transform_indices = @transform_7, window_bounds = array<i64: 8, 8>}]} {
    %c0 = arith.constant 0 : index
    %c0_0 = arith.constant 0 : index
    %0 = vector.load %arg1[%c0, %c0_0] : memref<8x16xf32, #tpu.memory_space<vmem>>, vector<8x16xf32>
    %1 = arith.truncf %0 : vector<8x16xf32> to vector<8x16xbf16>
    %c0_1 = arith.constant 0 : index
    %c0_2 = arith.constant 0 : index
    %2 = vector.load %arg2[%c0_1, %c0_2] : memref<16x128xbf16, #tpu.memory_space<vmem>>, vector<16x128xbf16>
    %c0_3 = arith.constant 0 : index
    %c0_4 = arith.constant 0 : index
    %3 = vector.load %arg3[%c0_3, %c0_4] : memref<1x128xf32, #tpu.memory_space<vmem>>, vector<1x128xf32>
    %cst = arith.constant dense<0.000000e+00> : vector<8x128xf32>
    %4 = tpu.matmul %1, %2, %cst {dimension_numbers = #tpu.dot_dimension_numbers<[1], [0], [0], [1], [0, 0, 1, 1], [], []>} : vector<8x16xbf16>, vector<16x128xbf16>, vector<8x128xf32> -> vector<8x128xf32>
    %5 = vector.broadcast %3 : vector<1x128xf32> to vector<8x128xf32>
    %6 = arith.addf %4, %5 : vector<8x128xf32>
    %cst_5 = arith.constant 0.000000e+00 : f32
    %7 = vector.broadcast %cst_5 : f32 to vector<8x128xf32>
    %8 = arith.maximumf %6, %7 : vector<8x128xf32>
    %9 = arith.truncf %8 : vector<8x128xf32> to vector<8x128xbf16>
    %c0_6 = arith.constant 0 : index
    %c0_7 = arith.constant 0 : index
    %10 = vector.load %arg4[%c0_6, %c0_7] : memref<128x128xbf16, #tpu.memory_space<vmem>>, vector<128x128xbf16>
    %c0_8 = arith.constant 0 : index
    %c0_9 = arith.constant 0 : index
    %11 = vector.load %arg5[%c0_8, %c0_9] : memref<1x128xf32, #tpu.memory_space<vmem>>, vector<1x128xf32>
    %cst_10 = arith.constant dense<0.000000e+00> : vector<8x128xf32>
    %12 = tpu.matmul %9, %10, %cst_10 {dimension_numbers = #tpu.dot_dimension_numbers<[1], [0], [0], [1], [0, 0, 1, 1], [], []>} : vector<8x128xbf16>, vector<128x128xbf16>, vector<8x128xf32> -> vector<8x128xf32>
    %13 = vector.broadcast %11 : vector<1x128xf32> to vector<8x128xf32>
    %14 = arith.addf %12, %13 : vector<8x128xf32>
    %cst_11 = arith.constant 0.000000e+00 : f32
    %15 = vector.broadcast %cst_11 : f32 to vector<8x128xf32>
    %16 = arith.maximumf %14, %15 : vector<8x128xf32>
    %17 = arith.truncf %16 : vector<8x128xf32> to vector<8x128xbf16>
    %c0_12 = arith.constant 0 : index
    %c0_13 = arith.constant 0 : index
    %18 = vector.load %arg6[%c0_12, %c0_13] : memref<128x8xbf16, #tpu.memory_space<vmem>>, vector<128x8xbf16>
    %c0_14 = arith.constant 0 : index
    %c0_15 = arith.constant 0 : index
    %19 = vector.load %arg7[%c0_14, %c0_15] : memref<1x8xf32, #tpu.memory_space<vmem>>, vector<1x8xf32>
    %cst_16 = arith.constant dense<0.000000e+00> : vector<8x8xf32>
    %20 = tpu.matmul %17, %18, %cst_16 {dimension_numbers = #tpu.dot_dimension_numbers<[1], [0], [0], [1], [0, 0, 1, 1], [], []>} : vector<8x128xbf16>, vector<128x8xbf16>, vector<8x8xf32> -> vector<8x8xf32>
    %21 = vector.broadcast %19 : vector<1x8xf32> to vector<8x8xf32>
    %22 = arith.addf %20, %21 : vector<8x8xf32>
    %c0_17 = arith.constant 0 : index
    %c0_18 = arith.constant 0 : index
    %23 = vector.load %arg8[%c0_17, %c0_18] : memref<8x8xf32, #tpu.memory_space<vmem>>, vector<8x8xf32>
    tpu.vector_store %arg8[%c0_17, %c0_18], %22 {strides = array<i32>} : memref<8x8xf32, #tpu.memory_space<vmem>>, vector<8x8xf32>,
    return
  }
  func.func @transform_0(%arg0: i32) -> (i32, i32) {
    %c0_i32 = arith.constant 0 : i32
    %c0_i32_0 = arith.constant 0 : i32
    return %arg0, %c0_i32 : i32, i32
  }
  func.func @transform_1(%arg0: i32) -> (i32, i32) {
    %c0_i32 = arith.constant 0 : i32
    %c0_i32_0 = arith.constant 0 : i32
    %c0_i32_1 = arith.constant 0 : i32
    return %c0_i32, %c0_i32_0 : i32, i32
  }
  func.func @transform_2(%arg0: i32) -> (i32, i32) {
    %c0_i32 = arith.constant 0 : i32
    %c0_i32_0 = arith.constant 0 : i32
    %c0_i32_1 = arith.constant 0 : i32
    return %c0_i32, %c0_i32_0 : i32, i32
  }
  func.func @transform_3(%arg0: i32) -> (i32, i32) {
    %c0_i32 = arith.constant 0 : i32
    %c0_i32_0 = arith.constant 0 : i32
    %c0_i32_1 = arith.constant 0 : i32
    return %c0_i32, %c0_i32_0 : i32, i32
  }
  func.func @transform_4(%arg0: i32) -> (i32, i32) {
    %c0_i32 = arith.constant 0 : i32
    %c0_i32_0 = arith.constant 0 : i32
    %c0_i32_1 = arith.constant 0 : i32
    return %c0_i32, %c0_i32_0 : i32, i32
  }
  func.func @transform_5(%arg0: i32) -> (i32, i32) {
    %c0_i32 = arith.constant 0 : i32
    %c0_i32_0 = arith.constant 0 : i32
    %c0_i32_1 = arith.constant 0 : i32
    return %c0_i32, %c0_i32_0 : i32, i32
  }
  func.func @transform_6(%arg0: i32) -> (i32, i32) {
    %c0_i32 = arith.constant 0 : i32
    %c0_i32_0 = arith.constant 0 : i32
    %c0_i32_1 = arith.constant 0 : i32
    return %c0_i32, %c0_i32_0 : i32, i32
  }
  func.func @transform_7(%arg0: i32) -> (i32, i32) {
    %c0_i32 = arith.constant 0 : i32
    %c0_i32_0 = arith.constant 0 : i32
    return %arg0, %c0_i32 : i32, i32
  }
}

module attributes {stable_mosaic.version = 11 : i64} {
  func.func @kernel(%arg0: i32, %arg1: memref<8x16xf32, #tpu.memory_space<vmem>>, %arg2: memref<16x128xbf16, #tpu.memory_space<vmem>>, %arg3: memref<1x128xf32, #tpu.memory_space<vmem>>, %arg4: memref<128x128xbf16, #tpu.memory_space<vmem>>, %arg5: memref<1x128xf32, #tpu.memory_space<vmem>>, %arg6: memref<128x8xbf16, #tpu.memory_space<vmem>>, %arg7: memref<1x8xf32, #tpu.memory_space<vmem>>, %arg8: memref<8x8xf32, #tpu.memory_space<vmem>>) attributes {dimension_semantics = [#tpu.dimension_semantics<parallel>], iteration_bounds = array<i64: 1>, scalar_prefetch = 0 : i64, scratch_operands = 0 : i64, tpu.core_type = #tpu.core_type<tc>, window_params = [{transform_indices = @transform_0, window_bounds = array<i64: 8, 16>}, {pipeline_mode = #tpu.pipeline_mode<synchronous>, transform_indices = @transform_1, window_bounds = array<i64: 16, 128>}, {pipeline_mode = #tpu.pipeline_mode<synchronous>, transform_indices = @transform_2, window_bounds = array<i64: 1, 128>}, {pipeline_mode = #tpu.pipeline_mode<synchronous>, transform_indices = @transform_3, window_bounds = array<i64: 128, 128>}, {pipeline_mode = #tpu.pipeline_mode<synchronous>, transform_indices = @transform_4, window_bounds = array<i64: 1, 128>}, {pipeline_mode = #tpu.pipeline_mode<synchronous>, transform_indices = @transform_5, window_bounds = array<i64: 128, 8>}, {pipeline_mode = #tpu.pipeline_mode<synchronous>, transform_indices = @transform_6, window_bounds = array<i64: 1, 8>}, {transform_indices = @transform_7, window_bounds = array<i64: 8, 8>}]} {
    %c0 = arith.constant 0 : index
    %c0_0 = arith.constant 0 : index
    %0 = vector.load %arg1[%c0, %c0_0] : memref<8x16xf32, #tpu.memory_space<vmem>>, vector<8x16xf32>
    %1 = arith.truncf %0 : vector<8x16xf32> to vector<8x16xbf16>
    %c0_1 = arith.constant 0 : index
    %c0_2 = arith.constant 0 : index
    %2 = vector.load %arg2[%c0_1, %c0_2] : memref<16x128xbf16, #tpu.memory_space<vmem>>, vector<16x128xbf16>
    %c0_3 = arith.constant 0 : index
    %c0_4 = arith.constant 0 : index
    %3 = vector.load %arg3[%c0_3, %c0_4] : memref<1x128xf32, #tpu.memory_space<vmem>>, vector<1x128xf32>
    %cst = arith.constant dense<0.000000e+00> : vector<8x128xf32>
    %4 = tpu.matmul %1, %2, %cst {dimension_numbers = #tpu.dot_dimension_numbers<[1], [0], [0], [1], [0, 0, 1, 1], [], []>} : vector<8x16xbf16>, vector<16x128xbf16>, vector<8x128xf32> -> vector<8x128xf32>
    %5 = vector.broadcast %3 : vector<1x128xf32> to vector<8x128xf32>
    %6 = arith.addf %4, %5 : vector<8x128xf32>
    %cst_5 = arith.constant 0.000000e+00 : f32
    %7 = vector.broadcast %cst_5 : f32 to vector<8x128xf32>
    %8 = arith.maximumf %6, %7 : vector<8x128xf32>
    %9 = arith.truncf %8 : vector<8x128xf32> to vector<8x128xbf16>
    %c0_6 = arith.constant 0 : index
    %c0_7 = arith.constant 0 : index
    %10 = vector.load %arg4[%c0_6, %c0_7] : memref<128x128xbf16, #tpu.memory_space<vmem>>, vector<128x128xbf16>
    %c0_8 = arith.constant 0 : index
    %c0_9 = arith.constant 0 : index
    %11 = vector.load %arg5[%c0_8, %c0_9] : memref<1x128xf32, #tpu.memory_space<vmem>>, vector<1x128xf32>
    %cst_10 = arith.constant dense<0.000000e+00> : vector<8x128xf32>
    %12 = tpu.matmul %9, %10, %cst_10 {dimension_numbers = #tpu.dot_dimension_numbers<[1], [0], [0], [1], [0, 0, 1, 1], [], []>} : vector<8x128xbf16>, vector<128x128xbf16>, vector<8x128xf32> -> vector<8x128xf32>
    %13 = vector.broadcast %11 : vector<1x128xf32> to vector<8x128xf32>
    %14 = arith.addf %12, %13 : vector<8x128xf32>
    %cst_11 = arith.constant 0.000000e+00 : f32
    %15 = vector.broadcast %cst_11 : f32 to vector<8x128xf32>
    %16 = arith.maximumf %14, %15 : vector<8x128xf32>
    %17 = arith.truncf %16 : vector<8x128xf32> to vector<8x128xbf16>
    %c0_12 = arith.constant 0 : index
    %c0_13 = arith.constant 0 : index
    %18 = vector.load %arg6[%c0_12, %c0_13] : memref<128x8xbf16, #tpu.memory_space<vmem>>, vector<128x8xbf16>
    %c0_14 = arith.constant 0 : index
    %c0_15 = arith.constant 0 : index
    %19 = vector.load %arg7[%c0_14, %c0_15] : memref<1x8xf32, #tpu.memory_space<vmem>>, vector<1x8xf32>
    %cst_16 = arith.constant dense<0.000000e+00> : vector<8x8xf32>
    %20 = tpu.matmul %17, %18, %cst_16 {dimension_numbers = #tpu.dot_dimension_numbers<[1], [0], [0], [1], [0, 0, 1, 1], [], []>} : vector<8x128xbf16>, vector<128x8xbf16>, vector<8x8xf32> -> vector<8x8xf32>
    %21 = vector.broadcast %19 : vector<1x8xf32> to vector<8x8xf32>
    %22 = arith.addf %20, %21 : vector<8x8xf32>
    %c0_17 = arith.constant 0 : index
    %c0_18 = arith.constant 0 : index
    %23 = vector.load %arg8[%c0_17, %c0_18] : memref<8x8xf32, #tpu.memory_space<vmem>>, vector<8x8xf32>
    tpu.vector_store %arg8[%c0_17, %c0_18], %22 {strides = array<i32>} : memref<8x8xf32, #tpu.memory_space<vmem>>, vector<8x8xf32>,
    return
  }
  func.func @transform_0(%arg0: i32) -> (i32, i32) {
    %c0_i32 = arith.constant 0 : i32
    %c0_i32_0 = arith.constant 0 : i32
    return %arg0, %c0_i32 : i32, i32
  }
  func.func @transform_1(%arg0: i32) -> (i32, i32) {
    %c0_i32 = arith.constant 0 : i32
    %c0_i32_0 = arith.constant 0 : i32
    %c0_i32_1 = arith.constant 0 : i32
    return %c0_i32, %c0_i32_0 : i32, i32
  }
  func.func @transform_2(%arg0: i32) -> (i32, i32) {
    %c0_i32 = arith.constant 0 : i32
    %c0_i32_0 = arith.constant 0 : i32
    %c0_i32_1 = arith.constant 0 : i32
    return %c0_i32, %c0_i32_0 : i32, i32
  }
  func.func @transform_3(%arg0: i32) -> (i32, i32) {
    %c0_i32 = arith.constant 0 : i32
    %c0_i32_0 = arith.constant 0 : i32
    %c0_i32_1 = arith.constant 0 : i32
    return %c0_i32, %c0_i32_0 : i32, i32
  }
  func.func @transform_4(%arg0: i32) -> (i32, i32) {
    %c0_i32 = arith.constant 0 : i32
    %c0_i32_0 = arith.constant 0 : i32
    %c0_i32_1 = arith.constant 0 : i32
    return %c0_i32, %c0_i32_0 : i32, i32
  }
  func.func @transform_5(%arg0: i32) -> (i32, i32) {
    %c0_i32 = arith.constant 0 : i32
    %c0_i32_0 = arith.constant 0 : i32
    %c0_i32_1 = arith.constant 0 : i32
    return %c0_i32, %c0_i32_0 : i32, i32
  }
  func.func @transform_6(%arg0: i32) -> (i32, i32) {
    %c0_i32 = arith.constant 0 : i32
    %c0_i32_0 = arith.constant 0 : i32
    %c0_i32_1 = arith.constant 0 : i32
    return %c0_i32, %c0_i32_0 : i32, i32
  }
  func.func @transform_7(%arg0: i32) -> (i32, i32) {
    %c0_i32 = arith.constant 0 : i32
    %c0_i32_0 = arith.constant 0 : i32
    return %arg0, %c0_i32 : i32, i32
  }
}

</mosaic_0001>

<bundles_post_ra>
// kernel: tpu_custom_call.1
= control target key start
LH: loop header
LB: loop body
LE: loop exit
PB: predicated region body
PF: predicated region fallthrough
CT: control target
= control target key end

     0   :  { %12 = vsyncpa [#allocation3], 0  ;;  %s669_s0 = inlined_call_operand.vmem [shape: f32[8,16], index: 0, kind: input, shape index: {}]   ;;  %s670_s1 = inlined_call_operand.hbm [shape: bf16[16,128], index: 1, kind: input, shape index: {}]   ;;  %s671_s2 = inlined_call_operand.vmem [shape: f32[1,128], index: 2, kind: input, shape index: {}]   ;;  %s672_s3 = inlined_call_operand.vmem [shape: bf16[128,128], index: 3, kind: input, shape index: {}]   ;;  %s673_s4 = inlined_call_operand.hbm [shape: f32[1,128], index: 4, kind: input, shape index: {}]   ;;  %s674_s5 = inlined_call_operand.vmem [shape: bf16[128,8], index: 5, kind: input, shape index: {}]   ;;  %s675_s6 = inlined_call_operand.vmem [shape: f32[1,8], index: 6, kind: input, shape index: {}]   ;;  %s676_s7 = inlined_call_operand.hbm [shape: f32[8,8], index: 7, kind: output, shape index: {}]  }
   0x1   :  { %13 = vsyncpa [#allocation6], 0 }
   0x2   :  { %14 = vsyncpa [#allocation4], 0  ;;  %s536_s24 = smov [#allocation2]  }
   0x3   :  { %s22_s25 = sshll.u32 %s536_s24, 4  ;;  %s23_s25 = int_to_ptr.vmem [resolvable:$true] %s22_s25 }
   0x4   :  { %s478_s26 = scalar_lea.vmem %s23_s25, 128  ;;  %p483_p1 = scmp.lt.s32.totalorder %s23_s25, %s23_s25 }
   0x5   :  { %p479_p0 = scmp.ne.s32.totalorder %s23_s25, %s478_s26  ;;  %p484_p2 = scmp.lt.s32.totalorder %s478_s26, %s478_s26 }
   0x7   :  { %p485_p3 = por %p484_p2, %p483_p1 }
   0x9   :  { %p486_p4 = pnand %p485_p3, %p479_p0 }
   0xb   :  { %489 = shalt.err (!%p486_p4)
}
   0xc   :  { %s537_s27 = smov 64   ;;  %s538_s28 = smov 4  }
   0xd   :  { %28 = dma.hbm_to_vmem [thread:$0]  %s670_s1, 128, %s23_s25, [#allocation3], %s537_s27, %s537_s27, %s538_s28  }
   0xe   :  { %s539_s8 = smov [#allocation5]  }
   0xf   :  { %s39_s9 = sshll.u32 %s539_s8, 4  ;;  %s40_s9 = int_to_ptr.vmem [resolvable:$true] %s39_s9 }
  0x10   :  { %s498_s10 = scalar_lea.vmem %s40_s9, 16  ;;  %s502_s11 = scalar_lea.vmem %s40_s9, 32 }
  0x11   :  { %p499_p5 = scmp.ne.s32.totalorder %s40_s9, %s498_s10  ;;  %p503_p6 = scmp.lt.s32.totalorder %s40_s9, %s40_s9 }
  0x12   :  { %p504_p7 = scmp.lt.s32.totalorder %s502_s11, %s498_s10 }
  0x14   :  { %p505_p8 = por %p504_p7, %p503_p6 }
  0x16   :  { %p506_p9 = pnand %p505_p8, %p499_p5 }
  0x18   :  { %509 = shalt.err (!%p506_p9)
}
  0x19   :  { %42 = dma.hbm_to_vmem [thread:$0]  %s673_s4, 16, %s40_s9, [#allocation6]  }
  0x1a   :  { %530 = dma.done.wait [#allocation3], 128  }
  0x1b   :  { %531 = vsyncadd [#allocation3], 4294967168 }
  0x1c   :  { %532 = dma.done.wait [#allocation6], 16  }
  0x1d   :  { %533 = vsyncadd [#allocation6], 4294967280  ;;  %v540_v0 = vmov 0.0   ;;  %vm541_vm0 = vmmov 0   ;;  %v453_v1 = vld [vmem:[#allocation2] sm:$0xff]   ;;  %vm71_vm1 = vcmask 130048  }
  0x1e   :  { %400 = vmatprep.subr.bf16.mxu0 %v540_v0  ;;  %402 = vmatprep.mubr.msk.bf16.mxu0 %vm541_vm0, %v540_v0  ;;  %v54_v2 = vld [vmem:[%s669_s0] sm:$0xff]  ;;  %v454_v4 = vld [vmem:[%s672_s3 + $0x38] sm:$0xff]   ;;  %v455_v5 = vld [vmem:[%s672_s3 + $0x30] sm:$0xff]   ;;  %s542_s21 = smov [#allocation7]   ;;  %vm341_vm2 = vcmask 64512  }
  0x1f   :  { %406 = vmatprep.subr.bf16.mxu1 %v540_v0  ;;  %422 = vmatprep.mubr.msk.bf16.mxu1 %vm541_vm0, %v540_v0  ;;  %v55_v3 = vpack.c.bf16 %v54_v2, %v54_v2  ;;  %v456_v6 = vld [vmem:[%s672_s3 + $0x28] sm:$0xff]   ;;  %v457_v7 = vld [vmem:[%s672_s3 + $0x20] sm:$0xff]   ;;  %v458_v8 = vld [vmem:[%s672_s3 + $0x18] sm:$0xff]   ;;  %s349_s22 = sshll.u32 %s542_s21, 4  ;;  %s350_s22 = int_to_ptr.vmem [resolvable:$true] %s349_s22 }
  0x20   :  { %401 = vmatpush3.bf16.msra.mxu0 %v453_v1  ;;  %407 = vmatpush3.bf16.msra.mxu1 %v454_v4  ;;  %v459_v9 = vld [vmem:[%s672_s3 + $0x10] sm:$0xff]   ;;  %v460_v10 = vld [vmem:[%s672_s3 + $0x8] sm:$0xff]   ;;  %v461_v11 = vld [vmem:[%s672_s3] sm:$0xff]   ;;  %p515_p11 = scmp.lt.s32.totalorder %s350_s22, %s350_s22 }
  0x21   :  { %426 = vmatprep.subr.bf16.mxu0 %v540_v0  ;;  %408 = vmatprep.subr.bf16.mxu1 %v540_v0  ;;  %v462_v12 = vld [vmem:[%s674_s5 + $0x38] sm:$0xff]   ;;  %v463_v13 = vld [vmem:[%s674_s5 + $0x30] sm:$0xff]   ;;  %v464_v14 = vld [vmem:[%s674_s5 + $0x28] sm:$0xff]  }
  0x22   :  { %v465_v15 = vld [vmem:[%s674_s5 + $0x20] sm:$0xff]   ;;  %v466_v16 = vld [vmem:[%s674_s5 + $0x18] sm:$0xff]   ;;  %v467_v17 = vld [vmem:[%s674_s5 + $0x10] sm:$0xff]  }
  0x23   :  { %403 = vmatmul.mubr.msk.bf16.vlgmr.msra.gmra.mxu0 %vm71_vm1, %v55_v3  ;;  %v359_v18 = vld [vmem:[%s671_s2] ss:$0 sm:$0xff]  ;;  %v468_v26 = vld [vmem:[%s674_s5 + $0x8] sm:$0xff]  }
  0x24   :  { %442 = vmatprep.mubr.msk.bf16.mxu0 %vm541_vm0, %v540_v0  ;;  %409 = vmatpush3.bf16.msra.mxu1 %v455_v5  ;;  %v469_v27 = vld [vmem:[%s674_s5] sm:$0xff]   ;;  %v362_v28 = vld [vmem:[#allocation5] ss:$0 sm:$0xff]  ;;  %s510_s5 = scalar_lea.vmem %s350_s22, 128 }
  0x25   :  { %410 = vmatprep.subr.bf16.mxu1 %v540_v0  ;;  %427 = vmatpush3.bf16.msra.mxu0 %v462_v12  ;;  %v371_v36 = vld [vmem:[%s675_s6] ss:$0 sm:$0xff]  ;;  %p511_p10 = scmp.ne.s32.totalorder %s350_s22, %s510_s5  ;;  %p516_p12 = scmp.lt.s32.totalorder %s510_s5, %s510_s5 }
  0x26   :  { %428 = vmatprep.subr.bf16.mxu0 %v540_v0 }
  0x27   :  { %p517_p13 = por %p516_p12, %p515_p11 }
  0x28   :  { %411 = vmatpush3.bf16.msra.mxu1 %v456_v6 }
  0x29   :  { %412 = vmatprep.subr.bf16.mxu1 %v540_v0  ;;  %429 = vmatpush3.bf16.msra.mxu0 %v463_v13  ;;  %p518_p0 = pnand %p517_p13, %p511_p10 }
  0x2a   :  { %430 = vmatprep.subr.bf16.mxu0 %v540_v0 }
  0x2c   :  { %413 = vmatpush3.bf16.msra.mxu1 %v457_v7 }
  0x2d   :  { %414 = vmatprep.subr.bf16.mxu1 %v540_v0  ;;  %431 = vmatpush3.bf16.msra.mxu0 %v464_v14 }
  0x2e   :  { %432 = vmatprep.subr.bf16.mxu0 %v540_v0 }
  0x30   :  { %415 = vmatpush3.bf16.msra.mxu1 %v458_v8 }
  0x31   :  { %416 = vmatprep.subr.bf16.mxu1 %v540_v0  ;;  %433 = vmatpush3.bf16.msra.mxu0 %v465_v15 }
  0x32   :  { %434 = vmatprep.subr.bf16.mxu0 %v540_v0 }
  0x34   :  { %417 = vmatpush3.bf16.msra.mxu1 %v459_v9 }
  0x35   :  { %418 = vmatprep.subr.bf16.mxu1 %v540_v0  ;;  %435 = vmatpush3.bf16.msra.mxu0 %v466_v16 }
  0x36   :  { %436 = vmatprep.subr.bf16.mxu0 %v540_v0 }
  0x38   :  { %419 = vmatpush3.bf16.msra.mxu1 %v460_v10 }
  0x39   :  { %420 = vmatprep.subr.bf16.mxu1 %v540_v0  ;;  %437 = vmatpush3.bf16.msra.mxu0 %v467_v17 }
  0x3a   :  { %438 = vmatprep.subr.bf16.mxu0 %v540_v0 }
  0x3c   :  { %421 = vmatpush3.bf16.msra.mxu1 %v461_v11 }
  0x3d   :  { %439 = vmatpush3.bf16.msra.mxu0 %v468_v26 }
  0x3e   :  { %440 = vmatprep.subr.bf16.mxu0 %v540_v0 }
  0x41   :  { %441 = vmatpush3.bf16.msra.mxu0 %v469_v27 }
  0xe3   :  { %v109_v19 = vpop.f32.mrf.mxu0 }
  0xe4   :  { %v110_v20 = vadd.f32 %v359_v18, %v109_v19 }
  0xe5   :  { %v404_v21 = vpop.f32.mrf.mxu0 }
  0xe6   :  { %v115_v22 = vmax.f32 %v110_v20, 0.0 }
  0xe7   :  { %v112_v23 = vpop.f32.mrf.mxu0 }
  0xe8   :  { %v116_v24 = vpack.c.bf16 %v115_v22, %v115_v22 }
  0xe9   :  { %v405_v25 = vpop.f32.mrf.mxu0 }
  0xea   :  { %423 = vmatmul.mubr.bf16.vlgmr.msra.gmra.mxu1 %v116_v24 }
 0x1aa   :  { %v222_v29 = vpop.f32.mrf.mxu1 }
 0x1ab   :  { %v223_v30 = vadd.f32 %v362_v28, %v222_v29 }
 0x1ac   :  { %v424_v31 = vpop.f32.mrf.mxu1 }
 0x1ad   :  { %v228_v32 = vmax.f32 %v223_v30, 0.0 }
 0x1ae   :  { %v225_v33 = vpop.f32.mrf.mxu1 }
 0x1af   :  { %v229_v34 = vpack.c.bf16 %v228_v32, %v228_v32 }
 0x1b0   :  { %v425_v35 = vpop.f32.mrf.mxu1 }
 0x1b1   :  { %443 = vmatmul.mubr.bf16.vlgmr.msra.gmra.mxu0 %v229_v34 }
 0x271   :  { %v335_v37 = vpop.f32.mrf.mxu0 }
 0x272   :  { %v336_v38 = vadd.f32 %v371_v36, %v335_v37 }
 0x273   :  { %v444_v39 = vpop.f32.mrf.mxu0 }
 0x274   :  { %342 = vst.msk [vmem:[#allocation7] sm:$0xff] %vm341_vm2, %v336_v38 }
 0x275   :  { %v338_v40 = vpop.f32.mrf.mxu0 }
 0x276   :  { %521 = shalt.err (!%p518_p0)
}
 0x277   :  { %352 = dma.vmem_to_hbm [thread:$0]  %s350_s22, 128, %s676_s7, [#allocation4]   ;;  %v445_v41 = vpop.f32.mrf.mxu0 }
 0x278   :  { %534 = dma.done.wait [#allocation4], 128  }
 0x279   :  { %535 = vsyncadd [#allocation4], 4294967168 }
 0x27a   :  { %356 = vsyncpa [#allocation3], 1 }
 0x27b   :  { %357 = vsyncpa [#allocation6], 1 }
 0x27c   :  { %358 = vsyncpa [#allocation4], 1 }

// kernel: tpu_custom_call.1
= control target key start
LH: loop header
LB: loop body
LE: loop exit
PB: predicated region body
PF: predicated region fallthrough
CT: control target
= control target key end

     0   :  { %12 = vsyncpa [#allocation3], 0  ;;  %s669_s0 = inlined_call_operand.vmem [shape: f32[8,16], index: 0, kind: input, shape index: {}]   ;;  %s670_s1 = inlined_call_operand.hbm [shape: bf16[16,128], index: 1, kind: input, shape index: {}]   ;;  %s671_s2 = inlined_call_operand.vmem [shape: f32[1,128], index: 2, kind: input, shape index: {}]   ;;  %s672_s3 = inlined_call_operand.vmem [shape: bf16[128,128], index: 3, kind: input, shape index: {}]   ;;  %s673_s4 = inlined_call_operand.hbm [shape: f32[1,128], index: 4, kind: input, shape index: {}]   ;;  %s674_s5 = inlined_call_operand.vmem [shape: bf16[128,8], index: 5, kind: input, shape index: {}]   ;;  %s675_s6 = inlined_call_operand.vmem [shape: f32[1,8], index: 6, kind: input, shape index: {}]   ;;  %s676_s7 = inlined_call_operand.hbm [shape: f32[8,8], index: 7, kind: output, shape index: {}]  }
   0x1   :  { %13 = vsyncpa [#allocation6], 0 }
   0x2   :  { %14 = vsyncpa [#allocation4], 0  ;;  %s536_s24 = smov [#allocation2]  }
   0x3   :  { %s22_s25 = sshll.u32 %s536_s24, 4  ;;  %s23_s25 = int_to_ptr.vmem [resolvable:$true] %s22_s25 }
   0x4   :  { %s478_s26 = scalar_lea.vmem %s23_s25, 128  ;;  %p483_p1 = scmp.lt.s32.totalorder %s23_s25, %s23_s25 }
   0x5   :  { %p479_p0 = scmp.ne.s32.totalorder %s23_s25, %s478_s26  ;;  %p484_p2 = scmp.lt.s32.totalorder %s478_s26, %s478_s26 }
   0x7   :  { %p485_p3 = por %p484_p2, %p483_p1 }
   0x9   :  { %p486_p4 = pnand %p485_p3, %p479_p0 }
   0xb   :  { %489 = shalt.err (!%p486_p4)
}
   0xc   :  { %s537_s27 = smov 64   ;;  %s538_s28 = smov 4  }
   0xd   :  { %28 = dma.hbm_to_vmem [thread:$0]  %s670_s1, 128, %s23_s25, [#allocation3], %s537_s27, %s537_s27, %s538_s28  }
   0xe   :  { %s539_s8 = smov [#allocation5]  }
   0xf   :  { %s39_s9 = sshll.u32 %s539_s8, 4  ;;  %s40_s9 = int_to_ptr.vmem [resolvable:$true] %s39_s9 }
  0x10   :  { %s498_s10 = scalar_lea.vmem %s40_s9, 16  ;;  %s502_s11 = scalar_lea.vmem %s40_s9, 32 }
  0x11   :  { %p499_p5 = scmp.ne.s32.totalorder %s40_s9, %s498_s10  ;;  %p503_p6 = scmp.lt.s32.totalorder %s40_s9, %s40_s9 }
  0x12   :  { %p504_p7 = scmp.lt.s32.totalorder %s502_s11, %s498_s10 }
  0x14   :  { %p505_p8 = por %p504_p7, %p503_p6 }
  0x16   :  { %p506_p9 = pnand %p505_p8, %p499_p5 }
  0x18   :  { %509 = shalt.err (!%p506_p9)
}
  0x19   :  { %42 = dma.hbm_to_vmem [thread:$0]  %s673_s4, 16, %s40_s9, [#allocation6]  }
  0x1a   :  { %530 = dma.done.wait [#allocation3], 128  }
  0x1b   :  { %531 = vsyncadd [#allocation3], 4294967168 }
  0x1c   :  { %532 = dma.done.wait [#allocation6], 16  }
  0x1d   :  { %533 = vsyncadd [#allocation6], 4294967280  ;;  %v540_v0 = vmov 0.0   ;;  %vm541_vm0 = vmmov 0   ;;  %v453_v1 = vld [vmem:[#allocation2] sm:$0xff]   ;;  %vm71_vm1 = vcmask 130048  }
  0x1e   :  { %400 = vmatprep.subr.bf16.mxu0 %v540_v0  ;;  %402 = vmatprep.mubr.msk.bf16.mxu0 %vm541_vm0, %v540_v0  ;;  %v54_v2 = vld [vmem:[%s669_s0] sm:$0xff]  ;;  %v454_v4 = vld [vmem:[%s672_s3 + $0x38] sm:$0xff]   ;;  %v455_v5 = vld [vmem:[%s672_s3 + $0x30] sm:$0xff]   ;;  %s542_s21 = smov [#allocation7]   ;;  %vm341_vm2 = vcmask 64512  }
  0x1f   :  { %406 = vmatprep.subr.bf16.mxu1 %v540_v0  ;;  %422 = vmatprep.mubr.msk.bf16.mxu1 %vm541_vm0, %v540_v0  ;;  %v55_v3 = vpack.c.bf16 %v54_v2, %v54_v2  ;;  %v456_v6 = vld [vmem:[%s672_s3 + $0x28] sm:$0xff]   ;;  %v457_v7 = vld [vmem:[%s672_s3 + $0x20] sm:$0xff]   ;;  %v458_v8 = vld [vmem:[%s672_s3 + $0x18] sm:$0xff]   ;;  %s349_s22 = sshll.u32 %s542_s21, 4  ;;  %s350_s22 = int_to_ptr.vmem [resolvable:$true] %s349_s22 }
  0x20   :  { %401 = vmatpush3.bf16.msra.mxu0 %v453_v1  ;;  %407 = vmatpush3.bf16.msra.mxu1 %v454_v4  ;;  %v459_v9 = vld [vmem:[%s672_s3 + $0x10] sm:$0xff]   ;;  %v460_v10 = vld [vmem:[%s672_s3 + $0x8] sm:$0xff]   ;;  %v461_v11 = vld [vmem:[%s672_s3] sm:$0xff]   ;;  %p515_p11 = scmp.lt.s32.totalorder %s350_s22, %s350_s22 }
  0x21   :  { %426 = vmatprep.subr.bf16.mxu0 %v540_v0  ;;  %408 = vmatprep.subr.bf16.mxu1 %v540_v0  ;;  %v462_v12 = vld [vmem:[%s674_s5 + $0x38] sm:$0xff]   ;;  %v463_v13 = vld [vmem:[%s674_s5 + $0x30] sm:$0xff]   ;;  %v464_v14 = vld [vmem:[%s674_s5 + $0x28] sm:$0xff]  }
  0x22   :  { %v465_v15 = vld [vmem:[%s674_s5 + $0x20] sm:$0xff]   ;;  %v466_v16 = vld [vmem:[%s674_s5 + $0x18] sm:$0xff]   ;;  %v467_v17 = vld [vmem:[%s674_s5 + $0x10] sm:$0xff]  }
  0x23   :  { %403 = vmatmul.mubr.msk.bf16.vlgmr.msra.gmra.mxu0 %vm71_vm1, %v55_v3  ;;  %v359_v18 = vld [vmem:[%s671_s2] ss:$0 sm:$0xff]  ;;  %v468_v26 = vld [vmem:[%s674_s5 + $0x8] sm:$0xff]  }
  0x24   :  { %442 = vmatprep.mubr.msk.bf16.mxu0 %vm541_vm0, %v540_v0  ;;  %409 = vmatpush3.bf16.msra.mxu1 %v455_v5  ;;  %v469_v27 = vld [vmem:[%s674_s5] sm:$0xff]   ;;  %v362_v28 = vld [vmem:[#allocation5] ss:$0 sm:$0xff]  ;;  %s510_s5 = scalar_lea.vmem %s350_s22, 128 }
  0x25   :  { %410 = vmatprep.subr.bf16.mxu1 %v540_v0  ;;  %427 = vmatpush3.bf16.msra.mxu0 %v462_v12  ;;  %v371_v36 = vld [vmem:[%s675_s6] ss:$0 sm:$0xff]  ;;  %p511_p10 = scmp.ne.s32.totalorder %s350_s22, %s510_s5  ;;  %p516_p12 = scmp.lt.s32.totalorder %s510_s5, %s510_s5 }
  0x26   :  { %428 = vmatprep.subr.bf16.mxu0 %v540_v0 }
  0x27   :  { %p517_p13 = por %p516_p12, %p515_p11 }
  0x28   :  { %411 = vmatpush3.bf16.msra.mxu1 %v456_v6 }
  0x29   :  { %412 = vmatprep.subr.bf16.mxu1 %v540_v0  ;;  %429 = vmatpush3.bf16.msra.mxu0 %v463_v13  ;;  %p518_p0 = pnand %p517_p13, %p511_p10 }
  0x2a   :  { %430 = vmatprep.subr.bf16.mxu0 %v540_v0 }
  0x2c   :  { %413 = vmatpush3.bf16.msra.mxu1 %v457_v7 }
  0x2d   :  { %414 = vmatprep.subr.bf16.mxu1 %v540_v0  ;;  %431 = vmatpush3.bf16.msra.mxu0 %v464_v14 }
  0x2e   :  { %432 = vmatprep.subr.bf16.mxu0 %v540_v0 }
  0x30   :  { %415 = vmatpush3.bf16.msra.mxu1 %v458_v8 }
  0x31   :  { %416 = vmatprep.subr.bf16.mxu1 %v540_v0  ;;  %433 = vmatpush3.bf16.msra.mxu0 %v465_v15 }
  0x32   :  { %434 = vmatprep.subr.bf16.mxu0 %v540_v0 }
  0x34   :  { %417 = vmatpush3.bf16.msra.mxu1 %v459_v9 }
  0x35   :  { %418 = vmatprep.subr.bf16.mxu1 %v540_v0  ;;  %435 = vmatpush3.bf16.msra.mxu0 %v466_v16 }
  0x36   :  { %436 = vmatprep.subr.bf16.mxu0 %v540_v0 }
  0x38   :  { %419 = vmatpush3.bf16.msra.mxu1 %v460_v10 }
  0x39   :  { %420 = vmatprep.subr.bf16.mxu1 %v540_v0  ;;  %437 = vmatpush3.bf16.msra.mxu0 %v467_v17 }
  0x3a   :  { %438 = vmatprep.subr.bf16.mxu0 %v540_v0 }
  0x3c   :  { %421 = vmatpush3.bf16.msra.mxu1 %v461_v11 }
  0x3d   :  { %439 = vmatpush3.bf16.msra.mxu0 %v468_v26 }
  0x3e   :  { %440 = vmatprep.subr.bf16.mxu0 %v540_v0 }
  0x41   :  { %441 = vmatpush3.bf16.msra.mxu0 %v469_v27 }
  0xe3   :  { %v109_v19 = vpop.f32.mrf.mxu0 }
  0xe4   :  { %v110_v20 = vadd.f32 %v359_v18, %v109_v19 }
  0xe5   :  { %v404_v21 = vpop.f32.mrf.mxu0 }
  0xe6   :  { %v115_v22 = vmax.f32 %v110_v20, 0.0 }
  0xe7   :  { %v112_v23 = vpop.f32.mrf.mxu0 }
  0xe8   :  { %v116_v24 = vpack.c.bf16 %v115_v22, %v115_v22 }
  0xe9   :  { %v405_v25 = vpop.f32.mrf.mxu0 }
  0xea   :  { %423 = vmatmul.mubr.bf16.vlgmr.msra.gmra.mxu1 %v116_v24 }
 0x1aa   :  { %v222_v29 = vpop.f32.mrf.mxu1 }
 0x1ab   :  { %v223_v30 = vadd.f32 %v362_v28, %v222_v29 }
 0x1ac   :  { %v424_v31 = vpop.f32.mrf.mxu1 }
 0x1ad   :  { %v228_v32 = vmax.f32 %v223_v30, 0.0 }
 0x1ae   :  { %v225_v33 = vpop.f32.mrf.mxu1 }
 0x1af   :  { %v229_v34 = vpack.c.bf16 %v228_v32, %v228_v32 }
 0x1b0   :  { %v425_v35 = vpop.f32.mrf.mxu1 }
 0x1b1   :  { %443 = vmatmul.mubr.bf16.vlgmr.msra.gmra.mxu0 %v229_v34 }
 0x271   :  { %v335_v37 = vpop.f32.mrf.mxu0 }
 0x272   :  { %v336_v38 = vadd.f32 %v371_v36, %v335_v37 }
 0x273   :  { %v444_v39 = vpop.f32.mrf.mxu0 }
 0x274   :  { %342 = vst.msk [vmem:[#allocation7] sm:$0xff] %vm341_vm2, %v336_v38 }
 0x275   :  { %v338_v40 = vpop.f32.mrf.mxu0 }
 0x276   :  { %521 = shalt.err (!%p518_p0)
}
 0x277   :  { %352 = dma.vmem_to_hbm [thread:$0]  %s350_s22, 128, %s676_s7, [#allocation4]   ;;  %v445_v41 = vpop.f32.mrf.mxu0 }
 0x278   :  { %534 = dma.done.wait [#allocation4], 128  }
 0x279   :  { %535 = vsyncadd [#allocation4], 4294967168 }
 0x27a   :  { %356 = vsyncpa [#allocation3], 1 }
 0x27b   :  { %357 = vsyncpa [#allocation6], 1 }
 0x27c   :  { %358 = vsyncpa [#allocation4], 1 }

</bundles_post_ra>
